<compile_context>
chip_gen: v6e
topology: v6e:2x2x1
jax: 0.10.0
libtpu: 0.0.40
codegen_flags: <defaults>
</compile_context>

<pallas_src>
from math import ceil, floor

import jax
import jax.numpy as jnp
from jax.experimental import pallas as pl
from jax.experimental.pallas import tpu as pltpu


# ---------------------------------------------------------------------------
# Kernel
# ---------------------------------------------------------------------------
def _invert_kernel(idx_ref, x_ref, o_ref):
    """One grid step == one (selected sample, row-chunk) tile.

    idx_ref : SMEM int32[num_apply]   (scalar-prefetched selected indices;
                                       only used by the index_maps)
    x_ref   : VMEM (1, TR, L) input tile of a *selected* sample
    o_ref   : VMEM (1, TR, L) output tile (aliased with the input array)
    """
    del idx_ref  # consumed by the BlockSpec index_maps, not the body
    x = x_ref[...]
    if jnp.issubdtype(x.dtype, jnp.floating):
        o_ref[...] = jnp.asarray(1.0, x.dtype) - x
    else:
        o_ref[...] = jnp.asarray(jnp.iinfo(x.dtype).max, x.dtype) - x


# ---------------------------------------------------------------------------
# Layout helpers
# ---------------------------------------------------------------------------
def _pick_lane_width(total: int):
    """Largest lane width (multiple of 128) dividing `total`, preferring >=8 rows."""
    fallback = None
    for lane in (8192, 4096, 2048, 1024, 512, 256, 128):
        if total % lane == 0:
            if total // lane >= 8:
                return lane
            if fallback is None:
                fallback = lane
    return fallback


def _pick_row_tile(rows: int, lane: int, itemsize: int,
                   target_bytes: int = 2 << 20) -> int:
    """Row-chunk TR (divisor of rows, multiple of 8 when chunking) <= target."""
    if rows * lane * itemsize <= target_bytes:
        return rows
    best = None
    for tr in range(8, rows, 8):
        if rows % tr == 0 and tr * lane * itemsize <= target_bytes:
            best = tr
    return best if best is not None else rows


# ---------------------------------------------------------------------------
# Wrapper
# ---------------------------------------------------------------------------
def batch_random_transform_kernel(imgs: jax.Array, indices: jax.Array) -> jax.Array:
    """Apply the transform only to imgs[indices]; other rows pass through untouched."""
    B, C, H, W = imgs.shape
    total = C * H * W
    itemsize = jnp.dtype(imgs.dtype).itemsize

    lane = _pick_lane_width(total)
    if lane is None:
        # total not a multiple of 128: fall back to full-sample (C, H*W) blocks
        rows, lane = C, H * W
    else:
        rows = total // lane

    x = imgs.reshape(B, rows, lane)
    tr = _pick_row_tile(rows, lane, itemsize)
    n_chunks = rows // tr
    num_apply = int(indices.shape[0])

    spec = pl.BlockSpec((1, tr, lane), lambda i, j, idx: (idx[i], j, 0))

    out = pl.pallas_call(
        _invert_kernel,
        out_shape=jax.ShapeDtypeStruct((B, rows, lane), imgs.dtype),
        grid_spec=pltpu.PrefetchScalarGridSpec(
            num_scalar_prefetch=1,
            grid=(num_apply, n_chunks),
            in_specs=[spec],
            out_specs=spec,
        ),
        # Alias the image operand (operand 1: [indices, x]) with the output so
        # unselected rows keep their original values with zero extra traffic.
        input_output_aliases={1: 0},
        compiler_params=pltpu.CompilerParams(
            dimension_semantics=("parallel", "parallel")),
    )(indices.astype(jnp.int32), x)

    return out.reshape(B, C, H, W)


# ---------------------------------------------------------------------------
# Module (JAX/Pallas port of BatchRandomTransform, invert as apply_transform)
# ---------------------------------------------------------------------------
class BatchRandomInvert:
    # TODO(synk): apply_transform is abstract in the PyTorch base class; a
    # concrete elementwise invert transform is used here.

    def __init__(self, p: float, inplace: bool = False) -> None:
        if not 0 <= p <= 1:
            raise ValueError(
                f"p should be superior or equal to 0 and inferior or equal to 1. Got {p}."
            )
        self.p = p
        # inplace has no semantic effect in JAX (functional arrays); kept for parity.
        self.inplace = inplace

    def _sample_indices(self, key: jax.Array, batch_size: int):
        """Reproduce forward()'s num_apply / index-selection logic (host-side)."""
        if self.p == 1:
            return batch_size, jnp.arange(batch_size, dtype=jnp.int32)

        k_coin, k_idx = jax.random.split(key)
        p_mul_batch_size = self.p * batch_size
        floor_apply = floor(p_mul_batch_size)
        ceil_apply = ceil(p_mul_batch_size)

        # host-side scalar draw, mirroring torch.rand(1).item()
        coin = float(jax.random.uniform(k_coin, ()))
        if floor_apply == 0 or ceil_apply == 0:
            num_apply = 1 if coin < self.p else 0
        elif floor_apply == ceil_apply:
            num_apply = floor_apply
        else:
            decimal = p_mul_batch_size % 1
            num_apply = floor_apply if decimal < coin else ceil_apply

        if num_apply == 0:
            return 0, jnp.zeros((0,), dtype=jnp.int32)
        if num_apply == 1:
            idx = jax.random.randint(k_idx, (1,), 0, batch_size, dtype=jnp.int32)
        else:
            idx = jax.random.permutation(k_idx, batch_size)[:num_apply].astype(jnp.int32)
        return num_apply, idx

    def __call__(self, imgs: jax.Array, key: jax.Array) -> jax.Array:
        if self.p == 0:
            return imgs
        batch_size = imgs.shape[0]
        num_apply, indices = self._sample_indices(key, batch_size)
        if num_apply == 0:
            # num_apply == 0: return the (clone of the) input unchanged.
            return imgs
        return batch_random_transform_kernel(imgs, indices)


# ---------------------------------------------------------------------------
# Demo / correctness check
# ---------------------------------------------------------------------------
if __name__ == "__main__":
    key = jax.random.PRNGKey(0)
    k_data, k_fwd = jax.random.split(key)

    B, C, H, W = 2, 4, 16, 16
    imgs = jax.random.uniform(k_data, (B, C, H, W), dtype=jnp.float32)

    module = BatchRandomInvert(p=0.5, inplace=False)

    # Pure-JAX reference using the same sampled indices (computed BEFORE the
    # kernel call so it is independent of any output aliasing).
    num_apply_ref, indices_ref = module._sample_indices(k_fwd, B)
    mask_ref = jnp.zeros((B,), dtype=jnp.bool_)
    if num_apply_ref > 0:
        mask_ref = mask_ref.at[indices_ref].set(True)
    expected = jnp.where(mask_ref[:, None, None, None], 1.0 - imgs, imgs)
    expected = jax.block_until_ready(expected)

    out = module(imgs, k_fwd)
    out = jax.block_until_ready(out)

    assert out.shape == imgs.shape and out.dtype == imgs.dtype
    assert jnp.allclose(out, expected, atol=1e-6), "mismatch vs reference"

    print("KERNEL_OK")
</pallas_src>

<mosaic_0001>
module attributes {stable_mosaic.version = 11 : i64} {
  func.func @_invert_kernel(%arg0: i32, %arg1: i32, %arg2: memref<1xi32, #tpu.memory_space<smem>>, %arg3: memref<1x8x128xf32, #tpu.memory_space<vmem>>, %arg4: memref<1x8x128xf32, #tpu.memory_space<vmem>>) attributes {dimension_semantics = [#tpu.dimension_semantics<parallel>, #tpu.dimension_semantics<parallel>], iteration_bounds = array<i64: 1, 1>, scalar_prefetch = 1 : i64, scratch_operands = 0 : i64, tpu.core_type = #tpu.core_type<tc>, window_params = [{transform_indices = @transform_0, window_bounds = array<i64: 1, 8, 128>}, {transform_indices = @transform_1, window_bounds = array<i64: 1, 8, 128>}]} {
    %c0 = arith.constant 0 : index
    %c0_0 = arith.constant 0 : index
    %c0_1 = arith.constant 0 : index
    %0 = vector.load %arg3[%c0, %c0_0, %c0_1] : memref<1x8x128xf32, #tpu.memory_space<vmem>>, vector<1x8x128xf32>
    %cst = arith.constant 1.000000e+00 : f32
    %1 = vector.broadcast %cst : f32 to vector<1x8x128xf32>
    %2 = arith.subf %1, %0 : vector<1x8x128xf32>
    %c0_2 = arith.constant 0 : index
    %c0_3 = arith.constant 0 : index
    %c0_4 = arith.constant 0 : index
    %3 = vector.load %arg4[%c0_2, %c0_3, %c0_4] : memref<1x8x128xf32, #tpu.memory_space<vmem>>, vector<1x8x128xf32>
    tpu.vector_store %arg4[%c0_2, %c0_3, %c0_4], %2 {strides = array<i32>} : memref<1x8x128xf32, #tpu.memory_space<vmem>>, vector<1x8x128xf32>,
    return
  }
  func.func @transform_0(%arg0: i32, %arg1: i32, %arg2: memref<1xi32, #tpu.memory_space<smem>>) -> (i32, i32, i32) {
    %0 = arith.index_cast %arg0 : i32 to index
    %1 = memref.load %arg2[%0] : memref<1xi32, #tpu.memory_space<smem>>
    %c0_i32 = arith.constant 0 : i32
    %c0_i32_0 = arith.constant 0 : i32
    return %1, %arg1, %c0_i32 : i32, i32, i32
  }
  func.func @transform_1(%arg0: i32, %arg1: i32, %arg2: memref<1xi32, #tpu.memory_space<smem>>) -> (i32, i32, i32) {
    %0 = arith.index_cast %arg0 : i32 to index
    %1 = memref.load %arg2[%0] : memref<1xi32, #tpu.memory_space<smem>>
    %c0_i32 = arith.constant 0 : i32
    %c0_i32_0 = arith.constant 0 : i32
    return %1, %arg1, %c0_i32 : i32, i32, i32
  }
}

</mosaic_0001>

<bundles_post_ra>
// kernel: tpu_custom_call.1
= control target key start
LH: loop header
LB: loop body
LE: loop exit
PB: predicated region body
PF: predicated region fallthrough
CT: control target
= control target key end

     0   :  { %8 = vsyncpa [#allocation5], 0  ;;  %s143_s0 = inlined_call_operand.<no memory space> [shape: s32[1], index: 0, kind: input, shape index: {}]   ;;  %s144_s1 = inlined_call_operand.hbm [shape: f32[2,8,128], index: 1, kind: input, shape index: {}, may-alias: {1,2}]   ;;  %s145_s2 = inlined_call_operand.hbm [shape: f32[2,8,128], index: 2, kind: output, shape index: {}, may-alias: {1,2}]  }
   0x1   :  { %9 = vsyncpa [#allocation6], 0  ;;  %s53_s11 = sshll.u32 %s143_s0, 7  ;;  %s105_s15 = smov [#allocation4]  }
   0x2   :  { %s17_s14 = scalar_lea.hbm %s144_s1, %s53_s11  ;;  %s19_s16 = sshll.u32 %s105_s15, 4  ;;  %s20_s16 = int_to_ptr.vmem [resolvable:$true] %s19_s16 }
   0x3   :  { %s57_s17 = scalar_lea.hbm %s17_s14, 128  ;;  %s59_s20 = scalar_lea.hbm %s144_s1, 256 }
   0x4   :  { %p58_p0 = scmp.ne.s32.totalorder %s17_s14, %s57_s17  ;;  %p60_p1 = scmp.lt.s32.totalorder %s17_s14, %s144_s1 }
   0x5   :  { %p61_p2 = scmp.lt.s32.totalorder %s59_s20, %s57_s17 }
   0x7   :  { %p62_p3 = por %p61_p2, %p60_p1 }
   0x9   :  { %p63_p4 = pnand %p62_p3, %p58_p0 }
   0xb   :  { %66 = shalt.err (!%p63_p4)
}
   0xc   :  { %s67_s0 = scalar_lea.vmem %s20_s16, 128  ;;  %p72_p6 = scmp.lt.s32.totalorder %s20_s16, %s20_s16 }
   0xd   :  { %p68_p5 = scmp.ne.s32.totalorder %s20_s16, %s67_s0  ;;  %p73_p7 = scmp.lt.s32.totalorder %s67_s0, %s67_s0 }
   0xf   :  { %p74_p8 = por %p73_p7, %p72_p6 }
  0x11   :  { %p75_p9 = pnand %p74_p8, %p68_p5 }
  0x13   :  { %78 = shalt.err (!%p75_p9)
}
  0x14   :  { %22 = dma.hbm_to_vmem [thread:$0]  %s17_s14, 128, %s20_s16, [#allocation5]  }
  0x15   :  { %101 = dma.done.wait [#allocation5], 128  }
  0x16   :  { %102 = vsyncadd [#allocation5], 4294967168  ;;  %s106_s23 = smov [#allocation7]   ;;  %v28_v0 = vld [vmem:[#allocation4] sm:$0xff]  ;;  %s38_s26 = scalar_lea.hbm %s145_s2, %s53_s11 }
  0x17   :  { %s40_s24 = sshll.u32 %s106_s23, 4  ;;  %v29_v1 = vsub.f32 1.0, %v28_v0  ;;  %s41_s24 = int_to_ptr.vmem [resolvable:$true] %s40_s24 }
  0x18   :  { %s79_s27 = scalar_lea.vmem %s41_s24, 128  ;;  %p84_p11 = scmp.lt.s32.totalorder %s41_s24, %s41_s24 }
  0x19   :  { %30 = vst [vmem:[#allocation7] sm:$0xff] %v29_v1  ;;  %p80_p10 = scmp.ne.s32.totalorder %s41_s24, %s79_s27  ;;  %p85_p12 = scmp.lt.s32.totalorder %s79_s27, %s79_s27 }
  0x1b   :  { %p86_p13 = por %p85_p12, %p84_p11 }
  0x1d   :  { %p87_p0 = pnand %p86_p13, %p80_p10 }
  0x1f   :  { %90 = shalt.err (!%p87_p0)
}
  0x20   :  { %s91_s28 = scalar_lea.hbm %s38_s26, 128  ;;  %s93_s3 = scalar_lea.hbm %s145_s2, 256 }
  0x21   :  { %p92_p1 = scmp.ne.s32.totalorder %s38_s26, %s91_s28  ;;  %p94_p2 = scmp.lt.s32.totalorder %s38_s26, %s145_s2 }
  0x22   :  { %p95_p3 = scmp.lt.s32.totalorder %s93_s3, %s91_s28 }
  0x24   :  { %p96_p4 = por %p95_p3, %p94_p2 }
  0x26   :  { %p97_p5 = pnand %p96_p4, %p92_p1 }
  0x28   :  { %100 = shalt.err (!%p97_p5)
}
  0x29   :  { %43 = dma.vmem_to_hbm [thread:$0]  %s41_s24, 128, %s38_s26, [#allocation6]  }
  0x2a   :  { %103 = dma.done.wait [#allocation6], 128  }
  0x2b   :  { %104 = vsyncadd [#allocation6], 4294967168 }
  0x2c   :  { %47 = vsyncpa [#allocation5], 1 }
  0x2d   :  { %48 = vsyncpa [#allocation6], 1 }

</bundles_post_ra>
